<compile_context>
chip_gen: v5e
topology: v5e:2x2
jax: 0.10.0
libtpu: 0.0.40
codegen_flags: <defaults>
</compile_context>

<pallas_src>
import functools

import jax
import jax.numpy as jnp
from jax.experimental import pallas as pl
from jax.experimental.pallas import tpu as pltpu


def _nf_forward_kernel(c_ref, b_ref, z_ref, wp_ref, up_ref, out_ref, *, num_flows):
    """Apply the whole planar-flow stack to one lane-packed batch tile.

    c_ref  : (K, K)    SMEM  C[k, j] = w_k . u_hat_j (only j < k is read)
    b_ref  : (K,)      SMEM  per-flow biases
    z_ref  : (TB, W)   VMEM  lane-packed latent tile, W = pack * D
    wp_ref : (K, W, P) VMEM  block-diagonal packed w_k   (P = pack)
    up_ref : (K, P, W) VMEM  block-diagonal packed u_hat_k
    out_ref: (TB, W)   VMEM  transformed tile
    """
    z = z_ref[...].astype(jnp.float32)            # f32 internals (v5e-friendly)
    acc = z
    ts = []
    # K is small and static -> trace-time unroll.  (For K >~ 32 switch to a
    # lax.fori_loop with dynamic wp_ref[k] indexing to bound vreg live ranges.)
    for k in range(num_flows):
        # Pre-activation of flow k for each packed batch group: (TB, P) on MXU.
        # (Default MXU precision; pass precision=HIGHEST for exact f32 accum.)
        s = jnp.dot(z, wp_ref[k], preferred_element_type=jnp.float32) + b_ref[k]
        # Exact correction for flows already applied (strictly lower-tri C).
        for j in range(k):
            s = s + c_ref[k, j] * ts[j]
        t_k = jnp.tanh(s)                         # EUP
        ts.append(t_k)
        # Planar update of flow k back to full lane width: (TB,P)@(P,W) on MXU.
        acc = acc + jnp.dot(t_k, up_ref[k], preferred_element_type=jnp.float32)
    out_ref[...] = acc.astype(out_ref.dtype)


def planar_flow_params(key, num_flows, dim, dtype=jnp.float32):
    """Deterministic parameter init for K planar flows; returns (w, u_hat, b)."""
    kw, ku, kb = jax.random.split(key, 3)
    w = 0.3 * jax.random.normal(kw, (num_flows, dim), dtype)
    u = 0.3 * jax.random.normal(ku, (num_flows, dim), dtype)
    b = 0.1 * jax.random.normal(kb, (num_flows, 1), dtype)
    # u_hat = u + (m(w.u) - w.u) * w / ||w||^2,  m(x) = -1 + softplus(x)
    wtu = jnp.sum(w * u, axis=-1, keepdims=True)                     # (K, 1)
    m = -1.0 + jax.nn.softplus(wtu)
    u_hat = u + (m - wtu) * w / jnp.sum(w * w, axis=-1, keepdims=True)
    return w, u_hat, b


def pack_planar_params(w, u_hat, pack):
    """Build lane-packed (block-diagonal) parameters and the coupling matrix C."""
    K, D = w.shape
    eye = jnp.eye(pack, dtype=jnp.float32)
    w = w.astype(jnp.float32)
    u_hat = u_hat.astype(jnp.float32)
    # wp3[k, g*D + d, h] = w[k, d] * eye[g, h]
    wp3 = jnp.einsum("kd,gh->kgdh", w, eye).reshape(K, pack * D, pack)
    # up3[k, g, h*D + d] = u_hat[k, d] * eye[g, h]
    up3 = jnp.einsum("kd,gh->kghd", u_hat, eye).reshape(K, pack, pack * D)
    # C[k, j] = w_k . u_hat_j ; only the strictly lower triangle (j < k) is used.
    c = jnp.tril(jnp.sum(w[:, None, :] * u_hat[None, :, :], axis=-1), k=-1)
    return wp3, up3, c


def _choose_block_rows(rows, requested):
    """Largest divisor of `rows` that is <= requested and sublane-friendly."""
    requested = max(1, min(requested, rows))
    for br in range(requested, 0, -1):
        if rows % br == 0 and (br % 8 == 0 or br == rows):
            return br
    return rows


def normalizing_flow_forward(z, w, u_hat, b, *, block_rows=512):
    """z: (B, D) -> (B, D) after applying all planar flows in sequence.

    block_rows counts *packed* rows (each packed row holds `pack` batch items).
    On v7x keep B large enough that rows // block_rows >= 2 so the parallel
    grid axis shards across both TensorCores.
    """
    B, D = z.shape
    K = w.shape[0]
    # Lane packing: fold `pack` batch rows into the 128-lane axis when D is a
    # small divisor of 128 so every load/store/matmul is lane-dense.
    pack = 128 // D if (D < 128 and 128 % D == 0) else 1
    if B % pack != 0:
        pack = 1
    # TODO(synk): if D is neither a divisor nor a multiple of 128, pad the
    # feature dim to a multiple of 128 in the wrapper for lane-dense stores.
    rows, width = B // pack, pack * D
    zp = z.reshape(rows, width)                      # free layout reshape
    wp3, up3, c = pack_planar_params(w, u_hat, pack)
    b_flat = b.reshape(K).astype(jnp.float32)

    br = _choose_block_rows(rows, block_rows)
    grid = (rows // br,)

    kernel = functools.partial(_nf_forward_kernel, num_flows=K)
    out = pl.pallas_call(
        kernel,
        out_shape=jax.ShapeDtypeStruct((rows, width), z.dtype),
        grid_spec=pltpu.PrefetchScalarGridSpec(
            num_scalar_prefetch=0,
            grid=grid,
            in_specs=[
                pl.BlockSpec(memory_space=pltpu.MemorySpace.SMEM),    # C  (K,K)
                pl.BlockSpec(memory_space=pltpu.MemorySpace.SMEM),    # b  (K,)
                pl.BlockSpec((br, width), lambda i: (i, 0)),          # z tile
                pl.BlockSpec((K, width, pack), lambda i: (0, 0, 0)),  # packed W
                pl.BlockSpec((K, pack, width), lambda i: (0, 0, 0)),  # packed U_hat
            ],
            out_specs=pl.BlockSpec((br, width), lambda i: (i, 0)),
        ),
        compiler_params=pltpu.CompilerParams(
            dimension_semantics=("parallel",),
        ),
    )(c, b_flat, zp, wp3, up3)
    return out.reshape(B, D)


def _reference_forward(z, w, u_hat, b):
    """Pure-JAX sequential reference of the same flow stack (ground truth)."""
    z = z.astype(jnp.float32)
    K = w.shape[0]
    for k in range(K):
        lin = jnp.sum(z * w[k][None, :], axis=-1, keepdims=True) + b[k, 0]
        z = z + u_hat[k][None, :] * jnp.tanh(lin)
    return z


if __name__ == "__main__":
    key = jax.random.PRNGKey(0)
    k_z, k_p = jax.random.split(key)

    B, D, K = 64, 32, 4   # small demo: batch, latent dim, number of planar flows
    z = jax.random.normal(k_z, (B, D), jnp.float32)
    w, u_hat, b = planar_flow_params(k_p, K, D)

    ref = _reference_forward(z, w, u_hat, b)

    # Default (single big tile) and an explicit multi-step grid configuration.
    out1 = jax.block_until_ready(normalizing_flow_forward(z, w, u_hat, b))
    out2 = jax.block_until_ready(normalizing_flow_forward(z, w, u_hat, b, block_rows=8))

    assert out1.shape == (B, D)
    # Tolerance allows for reduced-precision (bf16-pass) f32 MXU matmuls under
    # default precision; structural/indexing bugs would be O(0.1) and caught.
    assert jnp.allclose(out1, ref, atol=1e-2, rtol=1e-2), "mismatch vs reference"
    assert jnp.allclose(out2, ref, atol=1e-2, rtol=1e-2), "mismatch vs reference (tiled)"
    assert jnp.allclose(out1, out2, atol=1e-5, rtol=1e-5), "tiling changed the result"

    print("KERNEL_OK")
</pallas_src>

<mosaic_0001>
module attributes {stable_mosaic.version = 11 : i64} {
  func.func @_nf_forward_kernel(%arg0: i32, %arg1: memref<4x4xf32, #tpu.memory_space<smem>>, %arg2: memref<4xf32, #tpu.memory_space<smem>>, %arg3: memref<16x128xf32, #tpu.memory_space<vmem>>, %arg4: memref<4x128x4xf32, #tpu.memory_space<vmem>>, %arg5: memref<4x4x128xf32, #tpu.memory_space<vmem>>, %arg6: memref<16x128xf32, #tpu.memory_space<vmem>>) attributes {dimension_semantics = [#tpu.dimension_semantics<parallel>], iteration_bounds = array<i64: 1>, scalar_prefetch = 0 : i64, scratch_operands = 0 : i64, tpu.core_type = #tpu.core_type<tc>, window_params = [{transform_indices = @transform_0, window_bounds = array<i64: 4, 4>}, {transform_indices = @transform_1, window_bounds = array<i64: 4>}, {transform_indices = @transform_2, window_bounds = array<i64: 16, 128>}, {pipeline_mode = #tpu.pipeline_mode<synchronous>, transform_indices = @transform_3, window_bounds = array<i64: 4, 128, 4>}, {pipeline_mode = #tpu.pipeline_mode<synchronous>, transform_indices = @transform_4, window_bounds = array<i64: 4, 4, 128>}, {transform_indices = @transform_5, window_bounds = array<i64: 16, 128>}]} {
    %c0 = arith.constant 0 : index
    %c0_0 = arith.constant 0 : index
    %0 = vector.load %arg3[%c0, %c0_0] : memref<16x128xf32, #tpu.memory_space<vmem>>, vector<16x128xf32>
    %c0_1 = arith.constant 0 : index
    %c0_2 = arith.constant 0 : index
    %c0_3 = arith.constant 0 : index
    %1 = vector.load %arg4[%c0_1, %c0_2, %c0_3] : memref<4x128x4xf32, #tpu.memory_space<vmem>>, vector<1x128x4xf32>
    %2 = vector.shape_cast %1 : vector<1x128x4xf32> to vector<128x4xf32>
    %cst = arith.constant dense<0.000000e+00> : vector<16x4xf32>
    %3 = tpu.matmul %0, %2, %cst {dimension_numbers = #tpu.dot_dimension_numbers<[1], [0], [0], [1], [0, 0, 1, 1], [], []>} : vector<16x128xf32>, vector<128x4xf32>, vector<16x4xf32> -> vector<16x4xf32>
    %c0_4 = arith.constant 0 : index
    %4 = memref.load %arg2[%c0_4] : memref<4xf32, #tpu.memory_space<smem>>
    %5 = vector.broadcast %4 : f32 to vector<16x4xf32>
    %6 = arith.addf %3, %5 : vector<16x4xf32>
    %7 = math.tanh %6 : vector<16x4xf32>
    %c0_5 = arith.constant 0 : index
    %c0_6 = arith.constant 0 : index
    %c0_7 = arith.constant 0 : index
    %8 = vector.load %arg5[%c0_5, %c0_6, %c0_7] : memref<4x4x128xf32, #tpu.memory_space<vmem>>, vector<1x4x128xf32>
    %9 = vector.shape_cast %8 : vector<1x4x128xf32> to vector<4x128xf32>
    %cst_8 = arith.constant dense<0.000000e+00> : vector<16x128xf32>
    %10 = tpu.matmul %7, %9, %cst_8 {dimension_numbers = #tpu.dot_dimension_numbers<[1], [0], [0], [1], [0, 0, 1, 1], [], []>} : vector<16x4xf32>, vector<4x128xf32>, vector<16x128xf32> -> vector<16x128xf32>
    %11 = arith.addf %0, %10 : vector<16x128xf32>
    %c1 = arith.constant 1 : index
    %c0_9 = arith.constant 0 : index
    %c0_10 = arith.constant 0 : index
    %12 = vector.load %arg4[%c1, %c0_9, %c0_10] : memref<4x128x4xf32, #tpu.memory_space<vmem>>, vector<1x128x4xf32>
    %13 = vector.shape_cast %12 : vector<1x128x4xf32> to vector<128x4xf32>
    %cst_11 = arith.constant dense<0.000000e+00> : vector<16x4xf32>
    %14 = tpu.matmul %0, %13, %cst_11 {dimension_numbers = #tpu.dot_dimension_numbers<[1], [0], [0], [1], [0, 0, 1, 1], [], []>} : vector<16x128xf32>, vector<128x4xf32>, vector<16x4xf32> -> vector<16x4xf32>
    %c1_12 = arith.constant 1 : index
    %15 = memref.load %arg2[%c1_12] : memref<4xf32, #tpu.memory_space<smem>>
    %16 = vector.broadcast %15 : f32 to vector<16x4xf32>
    %17 = arith.addf %14, %16 : vector<16x4xf32>
    %c1_13 = arith.constant 1 : index
    %c0_14 = arith.constant 0 : index
    %18 = memref.load %arg1[%c1_13, %c0_14] : memref<4x4xf32, #tpu.memory_space<smem>>
    %19 = vector.broadcast %18 : f32 to vector<16x4xf32>
    %20 = arith.mulf %19, %7 : vector<16x4xf32>
    %21 = arith.addf %17, %20 : vector<16x4xf32>
    %22 = math.tanh %21 : vector<16x4xf32>
    %c1_15 = arith.constant 1 : index
    %c0_16 = arith.constant 0 : index
    %c0_17 = arith.constant 0 : index
    %23 = vector.load %arg5[%c1_15, %c0_16, %c0_17] : memref<4x4x128xf32, #tpu.memory_space<vmem>>, vector<1x4x128xf32>
    %24 = vector.shape_cast %23 : vector<1x4x128xf32> to vector<4x128xf32>
    %cst_18 = arith.constant dense<0.000000e+00> : vector<16x128xf32>
    %25 = tpu.matmul %22, %24, %cst_18 {dimension_numbers = #tpu.dot_dimension_numbers<[1], [0], [0], [1], [0, 0, 1, 1], [], []>} : vector<16x4xf32>, vector<4x128xf32>, vector<16x128xf32> -> vector<16x128xf32>
    %26 = arith.addf %11, %25 : vector<16x128xf32>
    %c2 = arith.constant 2 : index
    %c0_19 = arith.constant 0 : index
    %c0_20 = arith.constant 0 : index
    %27 = vector.load %arg4[%c2, %c0_19, %c0_20] : memref<4x128x4xf32, #tpu.memory_space<vmem>>, vector<1x128x4xf32>
    %28 = vector.shape_cast %27 : vector<1x128x4xf32> to vector<128x4xf32>
    %cst_21 = arith.constant dense<0.000000e+00> : vector<16x4xf32>
    %29 = tpu.matmul %0, %28, %cst_21 {dimension_numbers = #tpu.dot_dimension_numbers<[1], [0], [0], [1], [0, 0, 1, 1], [], []>} : vector<16x128xf32>, vector<128x4xf32>, vector<16x4xf32> -> vector<16x4xf32>
    %c2_22 = arith.constant 2 : index
    %30 = memref.load %arg2[%c2_22] : memref<4xf32, #tpu.memory_space<smem>>
    %31 = vector.broadcast %30 : f32 to vector<16x4xf32>
    %32 = arith.addf %29, %31 : vector<16x4xf32>
    %c2_23 = arith.constant 2 : index
    %c0_24 = arith.constant 0 : index
    %33 = memref.load %arg1[%c2_23, %c0_24] : memref<4x4xf32, #tpu.memory_space<smem>>
    %34 = vector.broadcast %33 : f32 to vector<16x4xf32>
    %35 = arith.mulf %34, %7 : vector<16x4xf32>
    %36 = arith.addf %32, %35 : vector<16x4xf32>
    %c2_25 = arith.constant 2 : index
    %c1_26 = arith.constant 1 : index
    %37 = memref.load %arg1[%c2_25, %c1_26] : memref<4x4xf32, #tpu.memory_space<smem>>
    %38 = vector.broadcast %37 : f32 to vector<16x4xf32>
    %39 = arith.mulf %38, %22 : vector<16x4xf32>
    %40 = arith.addf %36, %39 : vector<16x4xf32>
    %41 = math.tanh %40 : vector<16x4xf32>
    %c2_27 = arith.constant 2 : index
    %c0_28 = arith.constant 0 : index
    %c0_29 = arith.constant 0 : index
    %42 = vector.load %arg5[%c2_27, %c0_28, %c0_29] : memref<4x4x128xf32, #tpu.memory_space<vmem>>, vector<1x4x128xf32>
    %43 = vector.shape_cast %42 : vector<1x4x128xf32> to vector<4x128xf32>
    %cst_30 = arith.constant dense<0.000000e+00> : vector<16x128xf32>
    %44 = tpu.matmul %41, %43, %cst_30 {dimension_numbers = #tpu.dot_dimension_numbers<[1], [0], [0], [1], [0, 0, 1, 1], [], []>} : vector<16x4xf32>, vector<4x128xf32>, vector<16x128xf32> -> vector<16x128xf32>
    %45 = arith.addf %26, %44 : vector<16x128xf32>
    %c3 = arith.constant 3 : index
    %c0_31 = arith.constant 0 : index
    %c0_32 = arith.constant 0 : index
    %46 = vector.load %arg4[%c3, %c0_31, %c0_32] : memref<4x128x4xf32, #tpu.memory_space<vmem>>, vector<1x128x4xf32>
    %47 = vector.shape_cast %46 : vector<1x128x4xf32> to vector<128x4xf32>
    %cst_33 = arith.constant dense<0.000000e+00> : vector<16x4xf32>
    %48 = tpu.matmul %0, %47, %cst_33 {dimension_numbers = #tpu.dot_dimension_numbers<[1], [0], [0], [1], [0, 0, 1, 1], [], []>} : vector<16x128xf32>, vector<128x4xf32>, vector<16x4xf32> -> vector<16x4xf32>
    %c3_34 = arith.constant 3 : index
    %49 = memref.load %arg2[%c3_34] : memref<4xf32, #tpu.memory_space<smem>>
    %50 = vector.broadcast %49 : f32 to vector<16x4xf32>
    %51 = arith.addf %48, %50 : vector<16x4xf32>
    %c3_35 = arith.constant 3 : index
    %c0_36 = arith.constant 0 : index
    %52 = memref.load %arg1[%c3_35, %c0_36] : memref<4x4xf32, #tpu.memory_space<smem>>
    %53 = vector.broadcast %52 : f32 to vector<16x4xf32>
    %54 = arith.mulf %53, %7 : vector<16x4xf32>
    %55 = arith.addf %51, %54 : vector<16x4xf32>
    %c3_37 = arith.constant 3 : index
    %c1_38 = arith.constant 1 : index
    %56 = memref.load %arg1[%c3_37, %c1_38] : memref<4x4xf32, #tpu.memory_space<smem>>
    %57 = vector.broadcast %56 : f32 to vector<16x4xf32>
    %58 = arith.mulf %57, %22 : vector<16x4xf32>
    %59 = arith.addf %55, %58 : vector<16x4xf32>
    %c3_39 = arith.constant 3 : index
    %c2_40 = arith.constant 2 : index
    %60 = memref.load %arg1[%c3_39, %c2_40] : memref<4x4xf32, #tpu.memory_space<smem>>
    %61 = vector.broadcast %60 : f32 to vector<16x4xf32>
    %62 = arith.mulf %61, %41 : vector<16x4xf32>
    %63 = arith.addf %59, %62 : vector<16x4xf32>
    %64 = math.tanh %63 : vector<16x4xf32>
    %c3_41 = arith.constant 3 : index
    %c0_42 = arith.constant 0 : index
    %c0_43 = arith.constant 0 : index
    %65 = vector.load %arg5[%c3_41, %c0_42, %c0_43] : memref<4x4x128xf32, #tpu.memory_space<vmem>>, vector<1x4x128xf32>
    %66 = vector.shape_cast %65 : vector<1x4x128xf32> to vector<4x128xf32>
    %cst_44 = arith.constant dense<0.000000e+00> : vector<16x128xf32>
    %67 = tpu.matmul %64, %66, %cst_44 {dimension_numbers = #tpu.dot_dimension_numbers<[1], [0], [0], [1], [0, 0, 1, 1], [], []>} : vector<16x4xf32>, vector<4x128xf32>, vector<16x128xf32> -> vector<16x128xf32>
    %68 = arith.addf %45, %67 : vector<16x128xf32>
    %c0_45 = arith.constant 0 : index
    %c0_46 = arith.constant 0 : index
    %69 = vector.load %arg6[%c0_45, %c0_46] : memref<16x128xf32, #tpu.memory_space<vmem>>, vector<16x128xf32>
    tpu.vector_store %arg6[%c0_45, %c0_46], %68 {strides = array<i32>} : memref<16x128xf32, #tpu.memory_space<vmem>>, vector<16x128xf32>,
    return
  }
  func.func @transform_0(%arg0: i32) -> (i32, i32) {
    %c0_i32 = arith.constant 0 : i32
    %c0_i32_0 = arith.constant 0 : i32
    %c0_i32_1 = arith.constant 0 : i32
    return %c0_i32, %c0_i32_0 : i32, i32
  }
  func.func @transform_1(%arg0: i32) -> i32 {
    %c0_i32 = arith.constant 0 : i32
    %c0_i32_0 = arith.constant 0 : i32
    return %c0_i32 : i32
  }
  func.func @transform_2(%arg0: i32) -> (i32, i32) {
    %c0_i32 = arith.constant 0 : i32
    %c0_i32_0 = arith.constant 0 : i32
    return %arg0, %c0_i32 : i32, i32
  }
  func.func @transform_3(%arg0: i32) -> (i32, i32, i32) {
    %c0_i32 = arith.constant 0 : i32
    %c0_i32_0 = arith.constant 0 : i32
    %c0_i32_1 = arith.constant 0 : i32
    %c0_i32_2 = arith.constant 0 : i32
    return %c0_i32, %c0_i32_0, %c0_i32_1 : i32, i32, i32
  }
  func.func @transform_4(%arg0: i32) -> (i32, i32, i32) {
    %c0_i32 = arith.constant 0 : i32
    %c0_i32_0 = arith.constant 0 : i32
    %c0_i32_1 = arith.constant 0 : i32
    %c0_i32_2 = arith.constant 0 : i32
    return %c0_i32, %c0_i32_0, %c0_i32_1 : i32, i32, i32
  }
  func.func @transform_5(%arg0: i32) -> (i32, i32) {
    %c0_i32 = arith.constant 0 : i32
    %c0_i32_0 = arith.constant 0 : i32
    return %arg0, %c0_i32 : i32, i32
  }
}

</mosaic_0001>

<bundles_post_ra>
// kernel: tpu_custom_call.1
= control target key start
LH: loop header
LB: loop body
LE: loop exit
PB: predicated region body
PF: predicated region fallthrough
CT: control target
= control target key end

     0   :  { %10 = vsyncpa [#allocation4], 0  ;;  %s879_s0 = inlined_call_operand.vmem [shape: f32[4,4], index: 0, kind: input, shape index: {}]   ;;  %s880_s1 = inlined_call_operand.vmem [shape: f32[4], index: 1, kind: input, shape index: {}]   ;;  %s881_s2 = inlined_call_operand.vmem [shape: f32[16,128], index: 2, kind: input, shape index: {}]   ;;  %s882_s3 = inlined_call_operand.vmem [shape: f32[4,128,4], index: 3, kind: input, shape index: {}]   ;;  %s883_s4 = inlined_call_operand.vmem [shape: f32[4,4,128], index: 4, kind: input, shape index: {}]   ;;  %s884_s5 = inlined_call_operand.hbm [shape: f32[16,128], index: 5, kind: output, shape index: {}]  }
   0x1   :  { %11 = vsyncpa [#allocation6], 0 }
   0x2   :  { %12 = vsyncpa [#allocation3], 0  ;;  %s18_s20 = sshll.u32 %s879_s0, 4  ;;  %s27_s23 = sshll.u32 %s880_s1, 4  ;;  %s19_s20 = int_to_ptr.vmem [resolvable:$true] %s18_s20  ;;  %s28_s23 = int_to_ptr.vmem [resolvable:$true] %s27_s23 }
   0x3   :  { %s575_s24 = smov [#allocation2]   ;;  %s576_s25 = smov [#allocation5]  }
   0x4   :  { %21 = dma.vmem_to_smem %s19_s20, 64, %s575_s24, [#allocation4]  }
   0x5   :  { %30 = dma.vmem_to_smem %s28_s23, 16, %s576_s25, [#allocation6]  }
   0x6   :  { %569 = dma.done.wait [#allocation4], 64  }
   0x7   :  { %570 = vsyncadd [#allocation4], 4294967232 }
   0x8   :  { %571 = dma.done.wait [#allocation6], 16  }
   0x9   :  { %572 = vsyncadd [#allocation6], 4294967280 }
   0xa   :  { %45 = sfence }
   0xb   :  { %v63_v0 = vld [vmem:[%s882_s3 + $0x78] sm:$0xff]  ;;  %v62_v1 = vld [vmem:[%s882_s3 + $0x70] sm:$0xff]  ;;  %v61_v4 = vld [vmem:[%s882_s3 + $0x68] sm:$0xff]  ;;  %vm99_vm0 = vcmask 1043456   ;;  %s64_s17 = sld [smem:[#allocation5]]  ;;  %vm92_vm1 = vcmask 31744  }
   0xc   :  { %v444_v2 = vld [vmem:[%s882_s3 + $0xf8] sm:$0xff]  ;;  %66 = vmatpush.msra.mxu0 %v63_v0  ;;  %v443_v3 = vld [vmem:[%s882_s3 + $0xf0] sm:$0xff]  ;;  %v442_v5 = vld [vmem:[%s882_s3 + $0xe8] sm:$0xff]  ;;  %s445_s22 = sld [smem:[#allocation5 + $0x1]]  ;;  %s412_s13 = sshll.u32 %s884_s5, 4  ;;  %s413_s13 = int_to_ptr.hbm [resolvable:$true] %s412_s13 }
   0xd   :  { %147 = vmatpush.msra.mxu2 %v444_v2  ;;  %v60_v6 = vld [vmem:[%s882_s3 + $0x60] sm:$0xff]  ;;  %v59_v8 = vld [vmem:[%s882_s3 + $0x58] sm:$0xff]  ;;  %v58_v10 = vld [vmem:[%s882_s3 + $0x50] sm:$0xff]  ;;  %s446_s23 = sld [smem:[#allocation2 + $0x80]]  ;;  %s578_s14 = smov 128  }
   0xe   :  { %67 = vmatpush.msra.mxu0 %v62_v1  ;;  %v441_v7 = vld [vmem:[%s882_s3 + $0xe0] sm:$0xff]  ;;  %v440_v9 = vld [vmem:[%s882_s3 + $0xd8] sm:$0xff]  ;;  %v439_v11 = vld [vmem:[%s882_s3 + $0xd0] sm:$0xff]  ;;  %s469_s27 = sld [smem:[#allocation2 + $0x101]]  ;;  %s579_s15 = smov 8  }
   0xf   :  { %148 = vmatpush.msra.mxu2 %v443_v3  ;;  %v57_v12 = vld [vmem:[%s882_s3 + $0x48] sm:$0xff]  ;;  %v91_v14 = vld [vmem:[%s883_s4] sm:$0xf]  ;;  %v466_v15 = vld [vmem:[%s882_s3 + $0x178] sm:$0xff]  ;;  %s491_s6 = sld [smem:[#allocation2 + $0x180]] }
  0x10   :  { %68 = vmatpush.msra.mxu0 %v61_v4  ;;  %v438_v13 = vld [vmem:[%s882_s3 + $0xc8] sm:$0xff]  ;;  %v56_v16 = vld [vmem:[%s882_s3 + $0x40] sm:$0xff]  ;;  %426 = vmatpush.msk.msra.mxu1 %vm99_vm0, %v91_v14  ;;  %v465_v18 = vld [vmem:[%s882_s3 + $0x170] sm:$0xff]  ;;  %s490_s7 = sld [smem:[#allocation5 + $0x3]] }
  0x11   :  { %149 = vmatpush.msra.mxu2 %v442_v5  ;;  %v437_v17 = vld [vmem:[%s882_s3 + $0xc0] sm:$0xff]  ;;  %v55_v19 = vld [vmem:[%s882_s3 + $0x38] sm:$0xff]  ;;  %v464_v21 = vld [vmem:[%s882_s3 + $0x168] sm:$0xff]  ;;  %v65_v52 = vstv %s64_s17  ;;  %s492_s8 = sld [smem:[#allocation2 + $0x181]] }
  0x12   :  { %69 = vmatpush.msra.mxu0 %v60_v6  ;;  %v436_v20 = vld [vmem:[%s882_s3 + $0xb8] sm:$0xff]  ;;  %233 = vmatpush.msrb.mxu1 %v466_v15  ;;  %v54_v22 = vld [vmem:[%s882_s3 + $0x30] sm:$0xff]  ;;  %v53_v24 = vld [vmem:[%s882_s3 + $0x28] sm:$0xff]  ;;  %v146_v55 = vstv %s445_s22  ;;  %s468_s22 = sld [smem:[#allocation2 + $0x100]] }
  0x13   :  { %150 = vmatpush.msra.mxu2 %v441_v7  ;;  %v435_v23 = vld [vmem:[%s882_s3 + $0xb0] sm:$0xff]  ;;  %v434_v25 = vld [vmem:[%s882_s3 + $0xa8] sm:$0xff]  ;;  %v52_v26 = vld [vmem:[%s882_s3 + $0x20] sm:$0xff]  ;;  %v171_v57 = vstv %s446_s23  ;;  %s467_s23 = sld [smem:[#allocation5 + $0x2]] }
  0x14   :  { %70 = vmatpush.msra.mxu0 %v59_v8  ;;  %234 = vmatpush.msrb.mxu1 %v465_v18  ;;  %v433_v27 = vld [vmem:[%s882_s3 + $0xa0] sm:$0xff]  ;;  %v51_v28 = vld [vmem:[%s882_s3 + $0x18] sm:$0xff]  ;;  %v50_v30 = vld [vmem:[%s882_s3 + $0x10] sm:$0xff]  ;;  %s493_s9 = sld [smem:[#allocation2 + $0x182]] }
  0x15   :  { %151 = vmatpush.msra.mxu2 %v440_v9  ;;  %v432_v29 = vld [vmem:[%s882_s3 + $0x98] sm:$0xff]  ;;  %v431_v31 = vld [vmem:[%s882_s3 + $0x90] sm:$0xff]  ;;  %v49_v32 = vld [vmem:[%s882_s3 + $0x8] sm:$0xff] }
  0x16   :  { %71 = vmatpush.msra.mxu0 %v58_v10  ;;  %235 = vmatpush.msrb.mxu1 %v464_v21  ;;  %v430_v33 = vld [vmem:[%s882_s3 + $0x88] sm:$0xff]  ;;  %v48_v34 = vld [vmem:[%s882_s3] sm:$0xff]  ;;  %v462_v39 = vld [vmem:[%s882_s3 + $0x158] sm:$0xff] }
  0x17   :  { %152 = vmatpush.msra.mxu2 %v439_v11  ;;  %v429_v35 = vld [vmem:[%s882_s3 + $0x80] sm:$0xff]  ;;  %v735_v37 = vld [vmem:[%s881_s2 + $0x8] sm:$0xff]  ;;  %v461_v40 = vld [vmem:[%s882_s3 + $0x150] sm:$0xff] }
  0x18   :  { %72 = vmatpush.msra.mxu0 %v57_v12  ;;  %v728_v36 = vld [vmem:[%s881_s2] sm:$0xff]  ;;  %v460_v41 = vld [vmem:[%s882_s3 + $0x148] sm:$0xff]  ;;  %v458_v43 = vld [vmem:[%s882_s3 + $0x138] sm:$0xff] }
  0x19   :  { %153 = vmatpush.msra.mxu2 %v438_v13  ;;  %v463_v38 = vld [vmem:[%s882_s3 + $0x160] sm:$0xff]  ;;  %v457_v44 = vld [vmem:[%s882_s3 + $0x130] sm:$0xff]  ;;  %v456_v45 = vld [vmem:[%s882_s3 + $0x128] sm:$0xff] }
  0x1a   :  { %73 = vmatpush.msra.mxu0 %v56_v16  ;;  %236 = vmatpush.msrb.mxu1 %v463_v38  ;;  %v459_v42 = vld [vmem:[%s882_s3 + $0x140] sm:$0xff]  ;;  %v454_v47 = vld [vmem:[%s882_s3 + $0x118] sm:$0xff]  ;;  %v453_v49 = vld [vmem:[%s882_s3 + $0x110] sm:$0xff] }
  0x1b   :  { %154 = vmatpush.msra.mxu2 %v437_v17  ;;  %v455_v46 = vld [vmem:[%s882_s3 + $0x120] sm:$0xff]  ;;  %v452_v50 = vld [vmem:[%s882_s3 + $0x108] sm:$0xff]  ;;  %v489_v8 = vld [vmem:[%s882_s3 + $0x1f8] sm:$0xff] }
  0x1c   :  { %74 = vmatpush.msra.mxu0 %v55_v19  ;;  %237 = vmatpush.msrb.mxu1 %v462_v39  ;;  %v447_v48 = vld [vmem:[%s883_s4 + $0x4] sm:$0xf]  ;;  %v470_v7 = vld [vmem:[%s883_s4 + $0x8] sm:$0xf]  ;;  %v488_v9 = vld [vmem:[%s882_s3 + $0x1f0] sm:$0xff] }
  0x1d   :  { %155 = vmatpush.msra.mxu2 %v436_v20  ;;  %498 = vmatpush.msk.msra.mxu3 %vm99_vm0, %v447_v48  ;;  %v451_v51 = vld [vmem:[%s882_s3 + $0x100] sm:$0xff]  ;;  %v487_v10 = vld [vmem:[%s882_s3 + $0x1e8] sm:$0xff]  ;;  %v485_v12 = vld [vmem:[%s882_s3 + $0x1d8] sm:$0xff] }
  0x1e   :  { %75 = vmatpush.msra.mxu0 %v54_v22  ;;  %238 = vmatpush.msrb.mxu1 %v461_v40  ;;  %v486_v11 = vld [vmem:[%s882_s3 + $0x1e0] sm:$0xff]  ;;  %v484_v13 = vld [vmem:[%s882_s3 + $0x1d0] sm:$0xff]  ;;  %v483_v14 = vld [vmem:[%s882_s3 + $0x1c8] sm:$0xff] }
  0x1f   :  { %156 = vmatpush.msra.mxu2 %v435_v23  ;;  %471 = vmatpush.msk.msrb.mxu3 %vm99_vm0, %v470_v7  ;;  %v482_v15 = vld [vmem:[%s882_s3 + $0x1c0] sm:$0xff]  ;;  %v481_v16 = vld [vmem:[%s882_s3 + $0x1b8] sm:$0xff]  ;;  %v480_v17 = vld [vmem:[%s882_s3 + $0x1b0] sm:$0xff] }
  0x20   :  { %76 = vmatpush.msra.mxu0 %v53_v24  ;;  %239 = vmatpush.msrb.mxu1 %v460_v41  ;;  %v479_v19 = vld [vmem:[%s882_s3 + $0x1a8] sm:$0xff]  ;;  %v478_v20 = vld [vmem:[%s882_s3 + $0x1a0] sm:$0xff]  ;;  %v477_v21 = vld [vmem:[%s882_s3 + $0x198] sm:$0xff] }
  0x21   :  { %157 = vmatpush.msra.mxu2 %v434_v25  ;;  %v476_v22 = vld [vmem:[%s882_s3 + $0x190] sm:$0xff]  ;;  %v475_v24 = vld [vmem:[%s882_s3 + $0x188] sm:$0xff]  ;;  %v474_v25 = vld [vmem:[%s882_s3 + $0x180] sm:$0xff] }
  0x22   :  { %77 = vmatpush.msra.mxu0 %v52_v26  ;;  %240 = vmatpush.msrb.mxu1 %v459_v42  ;;  %v232_v26 = vstv %s467_s23 }
  0x23   :  { %158 = vmatpush.msra.mxu2 %v433_v27  ;;  %v257_v27 = vstv %s468_s22 }
  0x24   :  { %78 = vmatpush.msra.mxu0 %v51_v28  ;;  %241 = vmatpush.msrb.mxu1 %v458_v43 }
  0x25   :  { %159 = vmatpush.msra.mxu2 %v432_v29  ;;  %v263_v29 = vstv %s469_s27 }
  0x26   :  { %79 = vmatpush.msra.mxu0 %v50_v30  ;;  %242 = vmatpush.msrb.mxu1 %v457_v44 }
  0x27   :  { %160 = vmatpush.msra.mxu2 %v431_v31 }
  0x28   :  { %80 = vmatpush.msra.mxu0 %v49_v32  ;;  %243 = vmatpush.msrb.mxu1 %v456_v45 }
  0x29   :  { %161 = vmatpush.msra.mxu2 %v430_v33 }
  0x2a   :  { %81 = vmatpush.msra.mxu0 %v48_v34  ;;  %244 = vmatpush.msrb.mxu1 %v455_v46 }
  0x2b   :  { %162 = vmatpush.msra.mxu2 %v429_v35  ;;  %82 = vmatmul.f32.vlgmr.msra.gmra.mxu0 %v728_v36 }
  0x2c   :  { %163 = vmatmul.f32.vlgmr.msra.gmra.mxu2 %v728_v36  ;;  %245 = vmatpush.msrb.mxu1 %v454_v47 }
  0x2d   :  { %448 = vmatpush.msk.msrb.mxu2 %vm99_vm0, %v447_v48  ;;  %v494_v48 = vld [vmem:[%s883_s4 + $0xc] sm:$0xf]  ;;  %s577_s4 = smov [#allocation7]  }
  0x2e   :  { %246 = vmatpush.msrb.mxu1 %v453_v49  ;;  %495 = vmatpush.msk.msrb.mxu0 %vm99_vm0, %v494_v48  ;;  %s410_s10 = sshll.u32 %s577_s4, 4  ;;  %s411_s10 = int_to_ptr.vmem [resolvable:$true] %s410_s10 }
  0x30   :  { %247 = vmatpush.msrb.mxu1 %v452_v50 }
  0x32   :  { %248 = vmatpush.msrb.mxu1 %v451_v51 }
  0x33   :  { %85 = vmatmul.f32.gmra.mxu0 %v735_v37 }
  0x34   :  { %166 = vmatmul.f32.gmra.mxu2 %v735_v37 }
  0xa8   :  { %v83_v53 = vpop.f32.mrf.mxu0 }
  0xa9   :  { %v84_v54 = vadd.f32 %v83_v53, %v65_v52 }
  0xab   :  { %505 = vtanh.f32 %v84_v54 }
  0xaf   :  { %v164_v56 = vpop.f32.mrf.mxu2 }
  0xb0   :  { %v86_v58 = vpop.f32.mrf.mxu0  ;;  %v165_v59 = vadd.f32 %v164_v56, %v146_v55  ;;  %v349_v56 = vstv %s491_s6 }
  0xb1   :  { %v783_v60 = vpop.eup %505  ;;  %v87_v61 = vadd.f32 %v86_v58, %v65_v52  ;;  %v355_v58 = vstv %s492_s8 }
  0xb2   :  { %v172_v62 = vmul.f32 %v783_v60, %v171_v57  ;;  %427 = vmatmul.msk.f32.vlgmr.msra.gmra.mxu1 %vm92_vm1, %v783_v60  ;;  %v258_v31 = vmul.f32 %v783_v60, %v257_v27 }
  0xb3   :  { %507 = vtanh.f32 %v87_v61  ;;  %499 = vmatpush.msk.msra.mxu1 %vm99_vm0, %v494_v48  ;;  %v350_v61 = vmul.f32 %v783_v60, %v349_v56 }
  0xb4   :  { %v174_v63 = vadd.f32 %v172_v62, %v165_v59  ;;  %v361_v62 = vstv %s493_s9 }
  0xb6   :  { %509 = vtanh.f32 %v174_v63 }
  0xb7   :  { %v167_v0 = vpop.f32.mrf.mxu2 }
  0xb8   :  { %v168_v1 = vadd.f32 %v167_v0, %v146_v55 }
  0xb9   :  { %v788_v2 = vpop.eup %507 }
  0xba   :  { %v173_v3 = vmul.f32 %v788_v2, %v171_v57  ;;  %428 = vmatmul.msk.f32.gmra.mxu1 %vm92_vm1, %v788_v2  ;;  %v259_v39 = vmul.f32 %v788_v2, %v257_v27 }
  0xbc   :  { %v793_v4 = vpop.eup %509  ;;  %v175_v5 = vadd.f32 %v173_v3, %v168_v1 }
  0xbd   :  { %449 = vmatmul.msk.f32.vlgmr.msrb.gmra.mxu2 %vm92_vm1, %v793_v4  ;;  %v264_v33 = vmul.f32 %v793_v4, %v263_v29  ;;  %v356_v0 = vmul.f32 %v793_v4, %v355_v58 }
  0xbe   :  { %511 = vtanh.f32 %v175_v5 }
  0xc2   :  { %249 = vmatmul.f32.vlgmr.msrb.gmra.mxu1 %v728_v36 }
  0xc4   :  { %v798_v6 = vpop.eup %511 }
  0xc5   :  { %450 = vmatmul.msk.f32.vlgmr.msra.gmra.mxu3 %vm92_vm1, %v798_v6  ;;  %v265_v41 = vmul.f32 %v798_v6, %v263_v29 }
  0xc6   :  { %325 = vmatpush.msra.mxu3 %v489_v8  ;;  %v351_v8 = vmul.f32 %v788_v2, %v349_v56 }
  0xc8   :  { %326 = vmatpush.msra.mxu3 %v488_v9 }
  0xca   :  { %252 = vmatmul.f32.gmra.mxu1 %v735_v37  ;;  %327 = vmatpush.msra.mxu3 %v487_v10  ;;  %v357_v10 = vmul.f32 %v798_v6, %v355_v58 }
  0xcc   :  { %328 = vmatpush.msra.mxu3 %v486_v11 }
  0xce   :  { %329 = vmatpush.msra.mxu3 %v485_v12 }
  0xd0   :  { %330 = vmatpush.msra.mxu3 %v484_v13 }
  0xd2   :  { %331 = vmatpush.msra.mxu3 %v483_v14 }
  0xd4   :  { %332 = vmatpush.msra.mxu3 %v482_v15 }
  0xd6   :  { %333 = vmatpush.msra.mxu3 %v481_v16 }
  0xd8   :  { %334 = vmatpush.msra.mxu3 %v480_v17 }
  0xda   :  { %335 = vmatpush.msra.mxu3 %v479_v19 }
  0xdc   :  { %336 = vmatpush.msra.mxu3 %v478_v20 }
  0xde   :  { %337 = vmatpush.msra.mxu3 %v477_v21 }
  0xe0   :  { %338 = vmatpush.msra.mxu3 %v476_v22 }
  0xe2   :  { %339 = vmatpush.msra.mxu3 %v475_v24 }
  0xe4   :  { %340 = vmatpush.msra.mxu3 %v474_v25 }
 0x12f   :  { %v120_v18 = vpop.f32.mrf.mxu1 }
 0x130   :  { %v126_v47 = vadd.f32 %v120_v18, %v728_v36 }
 0x137   :  { %v123_v23 = vpop.f32.mrf.mxu1 }
 0x138   :  { %v127_v52 = vadd.f32 %v123_v23, %v735_v37 }
 0x13f   :  { %v250_v28 = vpop.f32.mrf.mxu1 }
 0x140   :  { %v251_v30 = vadd.f32 %v250_v28, %v232_v26  ;;  %v206_v46 = vpop.f32.mrf.mxu2 }
 0x141   :  { %v212_v49 = vadd.f32 %v206_v46, %v126_v47 }
 0x142   :  { %v260_v32 = vadd.f32 %v258_v31, %v251_v30 }
 0x144   :  { %v266_v34 = vadd.f32 %v264_v33, %v260_v32 }
 0x146   :  { %513 = vtanh.f32 %v266_v34 }
 0x147   :  { %v253_v35 = vpop.f32.mrf.mxu1 }
 0x148   :  { %v254_v38 = vadd.f32 %v253_v35, %v232_v26  ;;  %v209_v45 = vpop.f32.mrf.mxu3 }
 0x149   :  { %v213_v53 = vadd.f32 %v209_v45, %v127_v52 }
 0x14a   :  { %v261_v40 = vadd.f32 %v259_v39, %v254_v38 }
 0x14c   :  { %v514_v42 = vpop.eup %513  ;;  %v267_v43 = vadd.f32 %v265_v41, %v261_v40 }
 0x14d   :  { %472 = vmatmul.msk.f32.vlgmr.msrb.gmra.mxu3 %vm92_vm1, %v514_v42 }
 0x14e   :  { %515 = vtanh.f32 %v267_v43 }
 0x154   :  { %v516_v44 = vpop.eup %515 }
 0x155   :  { %473 = vmatmul.msk.f32.gmra.mxu3 %vm92_vm1, %v516_v44  ;;  %v363_v12 = vmul.f32 %v516_v44, %v361_v62 }
 0x15d   :  { %341 = vmatmul.f32.vlgmr.msra.gmra.mxu3 %v728_v36  ;;  %v324_v36 = vstv %s490_s7 }
 0x165   :  { %344 = vmatmul.f32.gmra.mxu3 %v735_v37  ;;  %v362_v37 = vmul.f32 %v514_v42, %v361_v62 }
 0x1d0   :  { %v298_v50 = vpop.f32.mrf.mxu3 }
 0x1d1   :  { %v304_v51 = vadd.f32 %v298_v50, %v212_v49 }
 0x1d8   :  { %v301_v54 = vpop.f32.mrf.mxu3 }
 0x1d9   :  { %v305_v55 = vadd.f32 %v301_v54, %v213_v53 }
 0x1e0   :  { %v342_v57 = vpop.f32.mrf.mxu3 }
 0x1e1   :  { %v343_v59 = vadd.f32 %v342_v57, %v324_v36 }
 0x1e3   :  { %v352_v63 = vadd.f32 %v350_v61, %v343_v59 }
 0x1e5   :  { %v358_v1 = vadd.f32 %v356_v0, %v352_v63 }
 0x1e7   :  { %v364_v3 = vadd.f32 %v362_v37, %v358_v1 }
 0x1e8   :  { %v345_v5 = vpop.f32.mrf.mxu3 }
 0x1e9   :  { %517 = vtanh.f32 %v364_v3  ;;  %v346_v7 = vadd.f32 %v345_v5, %v324_v36 }
 0x1eb   :  { %v353_v9 = vadd.f32 %v351_v8, %v346_v7 }
 0x1ed   :  { %v359_v11 = vadd.f32 %v357_v10, %v353_v9 }
 0x1ef   :  { %v518_v13 = vpop.eup %517  ;;  %v365_v14 = vadd.f32 %v363_v12, %v359_v11 }
 0x1f0   :  { %496 = vmatmul.msk.f32.vlgmr.msrb.gmra.mxu0 %vm92_vm1, %v518_v13 }
 0x1f1   :  { %519 = vtanh.f32 %v365_v14 }
 0x1f7   :  { %v520_v60 = vpop.eup %519 }
 0x1f8   :  { %497 = vmatmul.msk.f32.vlgmr.msra.gmra.mxu1 %vm92_vm1, %v520_v60 }
 0x26d   :  { %v396_v4 = vpop.f32.mrf.mxu0 }
 0x26e   :  { %v402_v15 = vadd.f32 %v396_v4, %v304_v51 }
 0x270   :  { %404 = vst [vmem:[#allocation7] sm:$0xff] %v402_v15 }
 0x275   :  { %v399_v2 = vpop.f32.mrf.mxu1 }
 0x276   :  { %v403_v6 = vadd.f32 %v399_v2, %v305_v55 }
 0x278   :  { %405 = vst [vmem:[#allocation7 + $0x8] sm:$0xff] %v403_v6 }
 0x279   :  { %418 = dma.vmem_to_hbm [thread:$0]  %s411_s10, 256, %s413_s13, [#allocation3], %s578_s14, %s578_s14, %s579_s15  }
 0x27a   :  { %573 = dma.done.wait [#allocation3], 256  }
 0x27b   :  { %574 = vsyncadd [#allocation3], 4294967040 }
 0x27c   :  { %423 = vsyncpa [#allocation3], 1 }
 0x27d   :  { %424 = vsyncpa [#allocation4], 1 }
 0x27e   :  { %425 = vsyncpa [#allocation6], 1 }

</bundles_post_ra>
